<compile_context>
chip_gen: v7x
topology: tpu7x:2x2x1
jax: 0.10.0
libtpu: 0.0.40
codegen_flags: <defaults>
</compile_context>

<pallas_src>
import functools

import jax
import jax.numpy as jnp
from jax.experimental import pallas as pl
from jax.experimental.pallas import tpu as pltpu


def _round_up(x, m):
    return (x + m - 1) // m * m


def _fused_mlp_kernel(x_ref, w_ref, b_ref, o_ref, acc_ref, *, compute_dtype):
    """One grid step = (batch-tile m, layer l); grid = (M_tiles, L).

    The activation for this batch tile lives in the f32 VMEM scratch `acc_ref`
    across the whole layer chain; only the final layer's result is written to HBM.
    """
    l = pl.program_id(1)

    # Load the input activation into the resident accumulator at the first layer.
    @pl.when(l == 0)
    def _():
        acc_ref[...] = x_ref[...].astype(jnp.float32)

    # MXU matmul (f32 accumulation) + single broadcast bias add per layer (VPU).
    a = acc_ref[...].astype(compute_dtype)
    y = jnp.dot(a, w_ref[0], preferred_element_type=jnp.float32)
    acc_ref[...] = y + b_ref[0]

    # Only the last layer writes back to HBM (lane-dense, padded output).
    @pl.when(l == pl.num_programs(1) - 1)
    def _():
        o_ref[...] = acc_ref[...].astype(o_ref.dtype)


def fused_linear_mlp(x, w_stack, b_stack, out_features, *,
                     compute_dtype=jnp.float32, batch_tile=256):
    """y = ((x @ W0 + b0) @ W1 + b1) ... with padded, stacked weights.

    x:        [B, Din]               (Din <= D)
    w_stack:  [L, D, D]   zero-padded, layer l valid in [:fan_in_l, :fan_out_l]
    b_stack:  [L, 1, D]   zero-padded (f32)
    """
    B, Din = x.shape
    L, D, _ = w_stack.shape

    # Pad batch to sublane multiple and make it divisible by the batch tile.
    bpad0 = _round_up(max(B, 1), 8)
    tm = min(_round_up(batch_tile, 8), bpad0)
    bpad = _round_up(bpad0, tm)

    # Zero-pad the input up to (bpad, D). Padded feature lanes stay zero through
    # the whole chain because padded weight rows/cols and bias lanes are zero;
    # padded batch rows are sliced off at the end.
    x_pad = jnp.zeros((bpad, D), x.dtype).at[:B, :Din].set(x)

    w_item = jnp.dtype(w_stack.dtype).itemsize
    x_item = jnp.dtype(x.dtype).itemsize

    flops = 2 * bpad * D * D * L
    bytes_accessed = (bpad * D * x_item                      # x in
                      + L * D * D * w_item                   # weights
                      + L * D * 4                            # biases (f32)
                      + bpad * D * x_item)                   # output

    # Double-buffered tiles + the f32 accumulator scratch; cap at v7x's 64 MiB VMEM.
    vmem_needed = (2 * tm * D * x_item          # x tile
                   + 2 * D * D * w_item         # weight tile
                   + 2 * D * 4                  # bias tile
                   + 2 * tm * D * x_item        # output tile
                   + tm * D * 4)                # accumulator scratch
    vmem_limit = int(min(max(2 * vmem_needed, 32 * 1024 * 1024), 64 * 1024 * 1024))

    out = pl.pallas_call(
        functools.partial(_fused_mlp_kernel, compute_dtype=compute_dtype),
        out_shape=jax.ShapeDtypeStruct((bpad, D), x.dtype),
        grid=(bpad // tm, L),
        in_specs=[
            pl.BlockSpec((tm, D), lambda m, l: (m, 0)),       # activation tile
            pl.BlockSpec((1, D, D), lambda m, l: (l, 0, 0)),  # layer-l weights
            pl.BlockSpec((1, 1, D), lambda m, l: (l, 0, 0)),  # layer-l bias
        ],
        out_specs=pl.BlockSpec((tm, D), lambda m, l: (m, 0)),
        scratch_shapes=[pltpu.VMEM((tm, D), jnp.float32)],
        compiler_params=pltpu.CompilerParams(
            dimension_semantics=("parallel", "arbitrary"),
            vmem_limit_bytes=vmem_limit,
        ),
        cost_estimate=pl.CostEstimate(
            flops=flops, transcendentals=0, bytes_accessed=bytes_accessed),
    )(x_pad, w_stack, b_stack)

    return out[:B, :out_features]


class LinearMLP:
    """JAX/Pallas port of the PyTorch LinearMLP: a chain of Linear layers with NO
    intermediate nonlinearity (matches nn.Sequential(*Linear...)). Forward only."""

    def __init__(self, arch=(100, 100), key=None, dtype=jnp.float32,
                 compute_dtype=jnp.float32):
        self.arch = list(arch)
        self.dtype = dtype
        self.compute_dtype = compute_dtype
        if key is None:
            key = jax.random.PRNGKey(0)

        # Per-layer (unpadded) params, mimicking torch's U(-1/sqrt(fan_in), 1/sqrt(fan_in)).
        self.params = []
        for i in range(len(self.arch) - 1):
            fan_in, fan_out = self.arch[i], self.arch[i + 1]
            key, wk, bk = jax.random.split(key, 3)
            bound = 1.0 / float(fan_in) ** 0.5
            w = jax.random.uniform(wk, (fan_in, fan_out), dtype, -bound, bound)
            b = jax.random.uniform(bk, (fan_out,), dtype, -bound, bound)
            self.params.append((w, b))

        # Pre-pad & stack once: one [L, D, D] weight slab + [L, 1, D] f32 bias slab,
        # D = max feature dim rounded up to the 128-lane width.
        num_layers = len(self.params)
        D = _round_up(max(self.arch), 128)
        w_stack = jnp.zeros((num_layers, D, D), compute_dtype)
        b_stack = jnp.zeros((num_layers, 1, D), jnp.float32)
        for l, (w, b) in enumerate(self.params):
            fi, fo = w.shape
            w_stack = w_stack.at[l, :fi, :fo].set(w.astype(compute_dtype))
            b_stack = b_stack.at[l, 0, :fo].set(b.astype(jnp.float32))
        self.w_stack = w_stack
        self.b_stack = b_stack
        self.padded_dim = D

    def __call__(self, x):
        return fused_linear_mlp(
            x, self.w_stack, self.b_stack, self.arch[-1],
            compute_dtype=self.compute_dtype)

    # TODO(synk): update_batch (loss / optimizer / backward) is a training loop, not a
    # forward-pass op; not implemented as a Pallas kernel.


def _reference_forward(x, params):
    for w, b in params:
        x = x @ w + b
    return x


if __name__ == "__main__":
    key = jax.random.PRNGKey(0)
    key, xk = jax.random.split(key)

    # Small, forward-consistent shapes: batch=8, arch=[32, 64, 32].
    batch = 8
    arch = [32, 64, 32]
    x = jax.random.normal(xk, (batch, arch[0]), jnp.float32)

    model = LinearMLP(arch=arch, key=key)   # f32 operands -> tight tolerance holds

    y = jax.block_until_ready(model(x))

    # Sanity-check against pure-JAX reference on the unpadded params.
    y_ref = _reference_forward(x, model.params)
    assert y.shape == (batch, arch[-1])
    assert jnp.allclose(y, y_ref, atol=1e-5, rtol=1e-5)

    print("KERNEL_OK")
</pallas_src>

<mosaic_0001>
module attributes {stable_mosaic.version = 11 : i64} {
  func.func @_fused_mlp_kernel(%arg0: i32, %arg1: i32, %arg2: memref<8x128xf32, #tpu.memory_space<vmem>>, %arg3: memref<1x128x128xf32, #tpu.memory_space<vmem>>, %arg4: memref<1x1x128xf32, #tpu.memory_space<vmem>>, %arg5: memref<8x128xf32, #tpu.memory_space<vmem>>, %arg6: memref<8x128xf32, #tpu.memory_space<vmem>>) attributes {dimension_semantics = [#tpu.dimension_semantics<parallel>, #tpu.dimension_semantics<arbitrary>], iteration_bounds = array<i64: 1, 2>, scalar_prefetch = 0 : i64, scratch_operands = 1 : i64, tpu.core_type = #tpu.core_type<tc>, window_params = [{transform_indices = @transform_0, window_bounds = array<i64: 8, 128>}, {transform_indices = @transform_1, window_bounds = array<i64: 1, 128, 128>}, {transform_indices = @transform_2, window_bounds = array<i64: 1, 1, 128>}, {transform_indices = @transform_3, window_bounds = array<i64: 8, 128>}]} {
    %c0_i32 = arith.constant 0 : i32
    %0 = arith.cmpi eq, %arg1, %c0_i32 : i32
    %1 = arith.extui %0 : i1 to i32
    %c0_i32_0 = arith.constant 0 : i32
    %2 = arith.cmpi ne, %1, %c0_i32_0 : i32
    scf.if %2 {
      %c0_11 = arith.constant 0 : index
      %c0_12 = arith.constant 0 : index
      %15 = vector.load %arg2[%c0_11, %c0_12] : memref<8x128xf32, #tpu.memory_space<vmem>>, vector<8x128xf32>
      %c0_13 = arith.constant 0 : index
      %c0_14 = arith.constant 0 : index
      %16 = vector.load %arg6[%c0_13, %c0_14] : memref<8x128xf32, #tpu.memory_space<vmem>>, vector<8x128xf32>
      tpu.vector_store %arg6[%c0_13, %c0_14], %15 {strides = array<i32>} : memref<8x128xf32, #tpu.memory_space<vmem>>, vector<8x128xf32>,
    } else {
    }
    %c0 = arith.constant 0 : index
    %c0_1 = arith.constant 0 : index
    %3 = vector.load %arg6[%c0, %c0_1] : memref<8x128xf32, #tpu.memory_space<vmem>>, vector<8x128xf32>
    %c0_2 = arith.constant 0 : index
    %c0_3 = arith.constant 0 : index
    %c0_4 = arith.constant 0 : index
    %4 = vector.load %arg3[%c0_2, %c0_3, %c0_4] : memref<1x128x128xf32, #tpu.memory_space<vmem>>, vector<1x128x128xf32>
    %5 = vector.shape_cast %4 : vector<1x128x128xf32> to vector<128x128xf32>
    %cst = arith.constant dense<0.000000e+00> : vector<8x128xf32>
    %6 = tpu.matmul %3, %5, %cst {dimension_numbers = #tpu.dot_dimension_numbers<[1], [0], [0], [1], [0, 0, 1, 1], [], []>} : vector<8x128xf32>, vector<128x128xf32>, vector<8x128xf32> -> vector<8x128xf32>
    %c0_5 = arith.constant 0 : index
    %c0_6 = arith.constant 0 : index
    %c0_7 = arith.constant 0 : index
    %7 = vector.load %arg4[%c0_5, %c0_6, %c0_7] : memref<1x1x128xf32, #tpu.memory_space<vmem>>, vector<1x1x128xf32>
    %8 = vector.shape_cast %7 : vector<1x1x128xf32> to vector<1x128xf32>
    %9 = vector.broadcast %8 : vector<1x128xf32> to vector<8x128xf32>
    %10 = arith.addf %6, %9 : vector<8x128xf32>
    %c0_8 = arith.constant 0 : index
    %c0_9 = arith.constant 0 : index
    %11 = vector.load %arg6[%c0_8, %c0_9] : memref<8x128xf32, #tpu.memory_space<vmem>>, vector<8x128xf32>
    tpu.vector_store %arg6[%c0_8, %c0_9], %10 {strides = array<i32>} : memref<8x128xf32, #tpu.memory_space<vmem>>, vector<8x128xf32>,
    %c1_i32 = arith.constant 1 : i32
    %12 = arith.cmpi eq, %arg1, %c1_i32 : i32
    %13 = arith.extui %12 : i1 to i32
    %c0_i32_10 = arith.constant 0 : i32
    %14 = arith.cmpi ne, %13, %c0_i32_10 : i32
    scf.if %14 {
      %c0_11 = arith.constant 0 : index
      %c0_12 = arith.constant 0 : index
      %15 = vector.load %arg6[%c0_11, %c0_12] : memref<8x128xf32, #tpu.memory_space<vmem>>, vector<8x128xf32>
      %c0_13 = arith.constant 0 : index
      %c0_14 = arith.constant 0 : index
      %16 = vector.load %arg5[%c0_13, %c0_14] : memref<8x128xf32, #tpu.memory_space<vmem>>, vector<8x128xf32>
      tpu.vector_store %arg5[%c0_13, %c0_14], %15 {strides = array<i32>} : memref<8x128xf32, #tpu.memory_space<vmem>>, vector<8x128xf32>,
    } else {
    }
    return
  }
  func.func @transform_0(%arg0: i32, %arg1: i32) -> (i32, i32) {
    %c0_i32 = arith.constant 0 : i32
    %c0_i32_0 = arith.constant 0 : i32
    return %arg0, %c0_i32 : i32, i32
  }
  func.func @transform_1(%arg0: i32, %arg1: i32) -> (i32, i32, i32) {
    %c0_i32 = arith.constant 0 : i32
    %c0_i32_0 = arith.constant 0 : i32
    %c0_i32_1 = arith.constant 0 : i32
    return %arg1, %c0_i32, %c0_i32_0 : i32, i32, i32
  }
  func.func @transform_2(%arg0: i32, %arg1: i32) -> (i32, i32, i32) {
    %c0_i32 = arith.constant 0 : i32
    %c0_i32_0 = arith.constant 0 : i32
    %c0_i32_1 = arith.constant 0 : i32
    return %arg1, %c0_i32, %c0_i32_0 : i32, i32, i32
  }
  func.func @transform_3(%arg0: i32, %arg1: i32) -> (i32, i32) {
    %c0_i32 = arith.constant 0 : i32
    %c0_i32_0 = arith.constant 0 : i32
    return %arg0, %c0_i32 : i32, i32
  }
}

</mosaic_0001>

<bundles_post_ra>
// kernel: tpu_custom_call.1
= control target key start
LH: loop header
LB: loop body
LE: loop exit
PB: predicated region body
PF: predicated region fallthrough
CT: control target
= control target key end

     0   :  { %8 = vsyncpa [#allocation4], 0  ;;  %s1000_s0 = inlined_call_operand.hbm [shape: f32[8,128], index: 0, kind: input, shape index: {}]   ;;  %s1001_s1 = inlined_call_operand.hbm [shape: f32[2,128,128], index: 1, kind: input, shape index: {}]   ;;  %s1002_s2 = inlined_call_operand.vmem [shape: f32[2,1,128], index: 2, kind: input, shape index: {}]   ;;  %s1003_s3 = inlined_call_operand.hbm [shape: f32[8,128], index: 3, kind: output, shape index: {}]  }
   0x1   :  { %9 = vsyncpa [#allocation7], 0 }
   0x2   :  { %11 = vsyncpa [#allocation7 + $0x1], 0 }
   0x3   :  { %12 = vsyncpa [#allocation5], 0  ;;  %s772_s12 = smov 0   ;;  %s774_s13 = smov 0  }
   0x4   :  { %s776_s14 = smov 0   ;;  %s778_s15 = smov 0  }
   0x5   :  { %s780_s16 = smov 0   ;;  %s782_s17 = smov 0  }
   0x6 LB: > { %s428_s18 = sadd.s32 4294967295, %s742_s17   ;;  %s63_s19 = sadd.s32 1, %s730_s14  ;;  %s742_s17 = sphi %s782_s17, %s18_s17   ;;  %s738_s16 = sphi %s780_s16, %s1024_s16   ;;  %s734_s15 = sphi %s778_s15, %s1023_s15   ;;  %s730_s14 = sphi %s776_s14, %s1022_s14   ;;  %s726_s13 = sphi %s774_s13, %s1021_s13   ;;  %s722_s12 = sphi %s772_s12, %s1020_s12  }
   0x7   : > { %p70_p0 = scmp.ne.s32.totalorder %s730_s14, %s726_s13  ;;  %p71_p1 = scmp.eq.s32.totalorder %s742_s17, 0 }
   0x8   : > { %p76_p2 = scmp.ne.s32.totalorder %s726_s13, %s722_s12  ;;  %p808_p3 = scmp.eq.s32.totalorder %s428_s18, 0 }
   0x9   : > { %p72_p4 = por %p71_p1, %p70_p0  ;;  %p429_p5 = scmp.ge.s32.totalorder %s742_s17, 1 }
   0xa   : > { %s1009_s20 = scalar_select %p808_p3, 1, 0 }
   0xb   : > { %p815_p6 = por %p808_p3, %p76_p2  ;;  %p139_p7 = scmp.lt.s32.totalorder %s742_s17, 3 }
   0xc   : > { %s744_s23 = smov [#allocation3]   ;;  %p541_p10 = scmp.lt.s32.totalorder %s742_s17, 2 }
   0xd   : > { %s1010_s21 = scalar_select %p815_p6, 1, 0 }
   0xe   : > { %p820_p8 = pnand %p429_p5, %p139_p7  ;;  %s154_s24 = sshll.u32 %s744_s23, 4  ;;  %s155_s24 = int_to_ptr.vmem [resolvable:$true] %s154_s24 }
   0xf   : > { %s165_s25 = sand.u32 1, %s730_s14   ;;  %p834_p12 = pnand %p541_p10, %p72_p4 }
  0x10   : > { %s1011_s22 = scalar_select %p820_p8, 1, 0 }
  0x11   : > { %p532_p9 = pneg %p820_p8  ;;  %s600_s30 = scalar_lea.hbm %s1000_s0, 128 }
  0x12   : > { %s1013_s27 = scalar_select %p834_p12, 1, 0 }
  0x13   : > { %p830_p11 = pnand %p532_p9, %p808_p3  ;;  %p601_p13 = scmp.ne.s32.totalorder %s1000_s0, %s600_s30 }
  0x14   : > { %p607_p5 = scmp.lt.u32.totalorder %s600_s30, %s1000_s0 }
  0x15   : > { %p602_p0 = pneg %p830_p11 }
  0x17   : > { %p603_p1 = pnand %p602_p0, %p601_p13 }
  0x19   : > { %p604_p2 = pneg %p603_p1 }
  0x1b   : > { %p609_p4 = pnand %p607_p5, %p604_p2 }
  0x1d   : > { %612 = shalt.err (!%p609_p4)
}
  0x1e   : > { %s613_s8 = scalar_lea.vmem %s155_s24, 128  ;;  %p621_p6 = scmp.lt.s32.totalorder %s155_s24, %s155_s24 }
  0x1f   : > { %p614_p7 = scmp.ne.s32.totalorder %s155_s24, %s613_s8  ;;  %p622_p3 = scmp.lt.s32.totalorder %s613_s8, %s613_s8 }
  0x21   : > { %p616_p9 = pnand %p614_p7, %p602_p0  ;;  %p623_p8 = por %p622_p3, %p621_p6 }
  0x23   : > { %p617_p10 = pneg %p616_p9 }
  0x25   : > { %p624_p12 = pnand %p623_p8, %p617_p10 }
  0x27   : > { %627 = shalt.err (!%p624_p12)
}
  0x28   : > { %535 = dma.hbm_to_vmem [thread:$0]  (!%p830_p11), %s1000_s0, 128, %s155_s24, [#allocation4]  }
  0x29   : > { %s27_s11 = sadd.s32 1, %s738_s16  ;;  %s432_s12 = sshll.u32 %s165_s25, 7 }
  0x2a   : > { %p28_p13 = scmp.ge.s32.totalorder %s27_s11, 2  ;;  %s445_s23 = sshll.u32 %s738_s16, 11 }
  0x2b   : > { %s169_s28 = scalar_lea.vmem [#allocation6], %s432_s12  ;;  %s863_s4 = scalar_lea.hbm %s1001_s1, %s445_s23 }
  0x2c   : > { %s176_s29 = sshll.u32 %s169_s28, 4  ;;  %s1026_s11 = smov (%p28_p13, %s27_s11), 0  ;;  %s865_s29 = int_to_ptr.vmem [resolvable:$true] %s176_s29 }
  0x2d   : > { %s60_s24 = ssub.s32 %s738_s16, %s1026_s11  ;;  %s875_s6 = scalar_lea.sflag [#allocation7], %s165_s25 }
  0x2e   : > { %p869_p3 = scmp.eq.s32.totalorder %s60_s24, 0  ;;  %s628_s7 = scalar_lea.hbm %s863_s4, 2048 }
  0x2f   : > { %p629_p6 = scmp.ne.s32.totalorder %s863_s4, %s628_s7  ;;  %p1015_p8 = scmp.ne.s32.totalorder %s1013_s27, 0 }
  0x30   : > { %s633_s10 = scalar_lea.hbm %s1001_s1, 4096  ;;  %p634_p1 = scmp.lt.u32.totalorder %s863_s4, %s1001_s1 }
  0x31   : > { %p630_p11 = pneg %p1015_p8  ;;  %p635_p2 = scmp.lt.u32.totalorder %s633_s10, %s628_s7 }
  0x32   : > { %p637_p4 = scmp.lt.u32.totalorder %s628_s7, %s863_s4 }
  0x33   : > { %p631_p12 = pnand %p630_p11, %p629_p6  ;;  %p636_p5 = por %p635_p2, %p634_p1 }
  0x35   : > { %p632_p0 = pneg %p631_p12  ;;  %p638_p7 = por %p637_p4, %p636_p5 }
  0x37   : > { %p639_p9 = pnand %p638_p7, %p632_p0 }
  0x39   : > { %642 = shalt.err (!%p639_p9)
}
  0x3a   : > { %s643_s25 = scalar_lea.vmem %s865_s29, 2048  ;;  %s745_s28 = smov [#allocation6]  }
  0x3b   : > { %p644_p10 = scmp.ne.s32.totalorder %s865_s29, %s643_s25  ;;  %s648_s26 = sshll.u32 %s745_s28, 4  ;;  %s649_s26 = int_to_ptr.vmem [resolvable:$false] %s648_s26 }
  0x3c   : > { %s650_s30 = scalar_lea.vmem %s649_s26, 4096  ;;  %p651_p12 = scmp.lt.s32.totalorder %s865_s29, %s649_s26 }
  0x3d   : > { %p646_p13 = pnand %p644_p10, %p630_p11  ;;  %p652_p1 = scmp.lt.s32.totalorder %s650_s30, %s643_s25 }
  0x3f   : > { %p647_p6 = pneg %p646_p13  ;;  %p653_p2 = por %p652_p1, %p651_p12 }
  0x41   : > { %p654_p5 = pnand %p653_p2, %p647_p6 }
  0x43   : > { %657 = shalt.err (!%p654_p5)
}
  0x44   : > { %s746_s24 = smov 128   ;;  %s747_s7 = smov 8  }
  0x45   : > { %539 = dma.hbm_to_vmem [thread:$0]  (!%p1015_p8), %s863_s4, 2048, %s865_s29, %s875_s6, %s746_s24, %s746_s24, %s747_s7  }
  0x46   : > { %s908_s8 = scalar_select %p869_p3, %s730_s14, %s63_s19  }
  0x47   : > { %p1016_p11 = scmp.ne.s32.totalorder %s1011_s22, 0 }
  0x48   : > { %p1017_p0 = scmp.ne.s32.totalorder (!%p1016_p11), %s1009_s20, 0 }
  0x49   : > { %194 = sbr.rel (%p1016_p11) target bundleno = 377 (0x179), region = 32 }
  0x50   : > { %709 = dma.done.wait (%p1017_p0), [#allocation4], 128  }
  0x51   : > { %711 = vsyncadd (%p1017_p0), [#allocation4], 4294967168  ;;  %s200_s9 = sand.u32 1, %s726_s13   ;;  %p1018_p8 = scmp.ne.s32.totalorder %s1010_s21, 0 }
  0x52   : > { %s437_s10 = sshll.u32 %s200_s9, 7  ;;  %s201_s12 = scalar_lea.sflag [#allocation7], %s200_s9 }
  0x53   : > { %s917_s27 = scalar_lea.vmem [#allocation6], %s437_s10 }
  0x54   : > { %713 = dma.done.wait (%p1018_p8), %s201_s12, 2048  }
  0x55   : > { %715 = vsyncadd (%p1018_p8), %s201_s12, 4294965248  ;;  %p225_p3 = scmp.lt.s32.totalorder %s734_s15, 1  ;;  %p438_p4 = scmp.ne.s32.totalorder %s734_s15, 0 }
  0x56   : > { %v232_v0 = vld [vmem:[#allocation3] sm:$0xff] (!%p438_p4) }
  0x57   : > { %s925_s19 = scalar_select %p225_p3, %s734_s15, 1 }
  0x58   : > { %231 = sbr.rel (%p438_p4) target bundleno = 95 (0x5f), region = 44  ;;  %233 = vst [vmem:[#allocation2] sm:$0xff] (!%p438_p4), %v232_v0 }
  0x59   : > { %s227_s29 = scalar_lea.vmem %s1002_s2, %s925_s19 }
  0x5f PF: > { %v235_v1 = vld [vmem:[%s917_s27] sm:$0xff]  ;;  %v236_v2 = vld [vmem:[%s917_s27 + $0x8] sm:$0xff]  ;;  %v237_v3 = vld [vmem:[%s917_s27 + $0x10] sm:$0xff]  ;;  %v748_v4 = vmov 0.0|0.0   ;;  %vm749_vm0 = vmmov 0   ;;  %v750_v7 = vmov 0.0  }
  0x60   : > { %498 = vmatprep.subr.bf16.mxu0 %v748_v4  ;;  %v499_v5 = vpack.c.bf16 %v236_v2, %v235_v1  ;;  %v238_v6 = vld [vmem:[%s917_s27 + $0x18] sm:$0xff]  ;;  %495 = vmatprep.mubr.msk.f32.mxu0 %vm749_vm0, %v750_v7  ;;  %v239_v9 = vld [vmem:[%s917_s27 + $0x20] sm:$0xff]  ;;  %v240_v10 = vld [vmem:[%s917_s27 + $0x28] sm:$0xff]  ;;  %p440_p7 = scmp.ne.s32.totalorder %s734_s15, 1 }
  0x61   : > { %v502_v8 = vpack.c.bf16 %v238_v6, %v237_v3  ;;  %v505_v11 = vpack.c.bf16 %v240_v10, %v239_v9  ;;  %v241_v12 = vld [vmem:[%s917_s27 + $0x30] sm:$0xff]  ;;  %v242_v13 = vld [vmem:[%s917_s27 + $0x38] sm:$0xff]  ;;  %v243_v15 = vld [vmem:[%s917_s27 + $0x40] sm:$0xff] }
  0x62   : > { %500 = vmatpush3.bf16.msra.mxu0 %v499_v5  ;;  %v508_v14 = vpack.c.bf16 %v242_v13, %v241_v12  ;;  %v244_v16 = vld [vmem:[%s917_s27 + $0x48] sm:$0xff]  ;;  %v245_v18 = vld [vmem:[%s917_s27 + $0x50] sm:$0xff]  ;;  %v246_v19 = vld [vmem:[%s917_s27 + $0x58] sm:$0xff] }
  0x63   : > { %501 = vmatprep.subr.bf16.mxu0 %v748_v4  ;;  %v511_v17 = vpack.c.bf16 %v244_v16, %v243_v15  ;;  %v514_v20 = vpack.c.bf16 %v246_v19, %v245_v18  ;;  %v247_v21 = vld [vmem:[%s917_s27 + $0x60] sm:$0xff]  ;;  %v248_v22 = vld [vmem:[%s917_s27 + $0x68] sm:$0xff]  ;;  %v249_v24 = vld [vmem:[%s917_s27 + $0x70] sm:$0xff] }
  0x64   : > { %v517_v23 = vpack.c.bf16 %v248_v22, %v247_v21  ;;  %v250_v25 = vld [vmem:[%s917_s27 + $0x78] sm:$0xff]  ;;  %v234_v27 = vld [vmem:[#allocation2] sm:$0xff] }
  0x65   : > { %v520_v26 = vpack.c.bf16 %v250_v25, %v249_v24  ;;  %v439_v28 = vld [vmem:[%s227_s29] ss:$0 sm:$0xff] }
  0x66   : > { %503 = vmatpush3.bf16.msra.mxu0 %v502_v8 }
  0x67   : > { %504 = vmatprep.subr.bf16.mxu0 %v748_v4 }
  0x6a   : > { %506 = vmatpush3.bf16.msra.mxu0 %v505_v11 }
  0x6b   : > { %507 = vmatprep.subr.bf16.mxu0 %v748_v4 }
  0x6e   : > { %509 = vmatpush3.bf16.msra.mxu0 %v508_v14 }
  0x6f   : > { %510 = vmatprep.subr.bf16.mxu0 %v748_v4 }
  0x72   : > { %512 = vmatpush3.bf16.msra.mxu0 %v511_v17 }
  0x73   : > { %513 = vmatprep.subr.bf16.mxu0 %v748_v4 }
  0x76   : > { %515 = vmatpush3.bf16.msra.mxu0 %v514_v20 }
  0x77   : > { %516 = vmatprep.subr.bf16.mxu0 %v748_v4 }
  0x7a   : > { %518 = vmatpush3.bf16.msra.mxu0 %v517_v23 }
  0x7b   : > { %519 = vmatprep.subr.bf16.mxu0 %v748_v4 }
  0x7e   : > { %521 = vmatpush3.bf16.msra.mxu0 %v520_v26 }
  0x81   : > { %496 = vmatmul.mubr.f32.vlgmr.msra.gmra.mrb[0].mxu0 %v234_v27 }
 0x151   : > { %332 = sbr.rel (%p440_p7) target bundleno = 352 (0x160), region = 48 }
 0x154   : > { %v324_v29 = vpop.f32.mrb[0].mxu0 }
 0x155   : > { %v325_v30 = vadd.f32 %v439_v28, %v324_v29  ;;  %v497_v31 = vpop.f32.mrb[1].mxu0 }
 0x157   : > { %328 = vst [vmem:[#allocation2] sm:$0xff] %v325_v30 }
 0x15e   : > { %v333_v32 = vld [vmem:[#allocation2] sm:$0xff] }
 0x15f   : > { %334 = vst [vmem:[#allocation8] sm:$0xff] %v333_v32 }
 0x160 PF: > { %p956_p9 = scmp.eq.s32.totalorder %s428_s18, 1  ;;  %s751_s6 = smov [#allocation8]  }
 0x161   : > { %s344_s23 = sshll.u32 %s751_s6, 4  ;;  %s345_s23 = int_to_ptr.vmem [resolvable:$true] %s344_s23 }
 0x162   : > { %s658_s25 = scalar_lea.vmem %s345_s23, 128  ;;  %p665_p12 = scmp.lt.s32.totalorder %s345_s23, %s345_s23 }
 0x163   : > { %p659_p10 = scmp.ne.s32.totalorder %s345_s23, %s658_s25  ;;  %p666_p1 = scmp.lt.s32.totalorder %s658_s25, %s658_s25 }
 0x165   : > { %p660_p13 = pnand %p659_p10, %p956_p9  ;;  %p667_p2 = por %p666_p1, %p665_p12 }
 0x167   : > { %p661_p6 = pneg %p660_p13 }
 0x169   : > { %p668_p5 = pnand %p667_p2, %p661_p6 }
 0x16b   : > { %671 = shalt.err (!%p668_p5)
}
 0x16c   : > { %s672_s18 = scalar_lea.hbm %s1003_s3, 128 }
 0x16d   : > { %p673_p11 = scmp.ne.s32.totalorder %s1003_s3, %s672_s18  ;;  %p678_p3 = scmp.lt.u32.totalorder %s672_s18, %s1003_s3 }
 0x16f   : > { %p674_p0 = pnand %p673_p11, %p956_p9 }
 0x171   : > { %p675_p8 = pneg %p674_p0 }
 0x173   : > { %p680_p4 = pnand %p678_p3, %p675_p8 }
 0x175   : > { %683 = shalt.err (!%p680_p4)
}
 0x176   : > { %529 = dma.vmem_to_hbm [thread:$0]  (%p956_p9), %s345_s23, 128, %s1003_s3, [#allocation5]  }
 0x177   : > { %717 = dma.done.wait (%p956_p9), [#allocation5], 128  }
 0x178   : > { %719 = vsyncadd (%p956_p9), [#allocation5], 4294967168 }
 0x179 PF: > { %s18_s17 = sadd.s32 1, %s742_s17   ;;  %s1020_s12 = smov %s726_s13 }
 0x17a   : > { %p15_p7 = scmp.ge.s32.totalorder %s18_s17, 4   ;;  %s1021_s13 = smov %s730_s14 }
 0x17b   : > { %s1022_s14 = smov %s908_s8  ;;  %s1023_s15 = smov %s738_s16 }
 0x17c   : > { %s1024_s16 = smov %s1026_s11  ;;  %17 = sbr.rel (!%p15_p7) target bundleno = 6 (0x6), region = 87 }
 0x183   :  { %357 = vsyncpa [#allocation4], 1 }
 0x184   :  { %359 = vsyncpa [#allocation4 + $0x1], 1 }
 0x185   :  { %360 = vsyncpa [#allocation7], 1 }
 0x186   :  { %362 = vsyncpa [#allocation7 + $0x1], 1 }
 0x187   :  { %363 = vsyncpa [#allocation5], 1 }
 0x188   :  { %365 = vsyncpa [#allocation5 + $0x1], 1 }

</bundles_post_ra>
